<compile_context>
chip_gen: v6e
topology: v6e:2x2x1
jax: 0.10.0
libtpu: 0.0.40
codegen_flags: <defaults>
</compile_context>

<pallas_src>
import jax
import jax.numpy as jnp
from jax.experimental import pallas as pl
from jax.experimental.pallas import tpu as pltpu

# ------------------------------ problem sizes -------------------------------
N_CLS = 4                     # number of classnames
N_CTX = 4                     # learnable context tokens (module hardcodes 4)
CTX_DIM = 128                 # ctx_dim (lane-aligned)
SEQ_LEN = 16                  # total prompt length (CLIP uses 77; small here)
N_SUF = SEQ_LEN - 1 - N_CTX   # suffix tokens per class
BATCH = 8                     # batch size of (bias, target)
B_TILE = 4                    # batch elements per grid step

DTYPE = jnp.float32


def _prompt_kernel(target_ref, prefix_ref, suffix_ref, ctx_ref, bias_ref, out_ref):
    """One grid step assembles B_TILE prompts.

    target_ref: (B,)               int32, SMEM (scalar prefetch)
    prefix_ref: (N_CLS, 1, D)      resident class table
    suffix_ref: (N_CLS, N_SUF, D)  resident class table
    ctx_ref:    (N_CTX, D)         shared learnable context
    bias_ref:   (B_TILE, 1, D)     per-batch bias
    out_ref:    (B_TILE, SEQ, D)   prompts for this batch tile
    """
    base = pl.program_id(0) * B_TILE

    # One vectorized VPU add for the whole tile: (B_TILE, N_CTX, D).
    shifted = ctx_ref[...][None, :, :] + bias_ref[...]

    # Class-row gather for each element in the tile (scalar-indexed VMEM loads,
    # statically unrolled: B_TILE is tiny).
    pre_rows = []
    suf_rows = []
    for j in range(B_TILE):
        t = target_ref[base + j]              # class id (SMEM scalar)
        pre_rows.append(prefix_ref[t])        # (1, D)
        suf_rows.append(suffix_ref[t])        # (N_SUF, D)
    prefix = jnp.stack(pre_rows, axis=0)      # (B_TILE, 1, D)
    suffix = jnp.stack(suf_rows, axis=0)      # (B_TILE, N_SUF, D)

    # Single aligned, lane-dense store of the whole tile.
    out_ref[...] = jnp.concatenate([prefix, shifted, suffix], axis=1).astype(out_ref.dtype)


def prompt_learner_forward(token_prefix, token_suffix, ctx, bias, target):
    """Pallas implementation of PromptLearner_h.forward(bias, target).

    token_prefix: (N_CLS, 1, D)
    token_suffix: (N_CLS, N_SUF, D)
    ctx:          (N_CTX, D)
    bias:         (B, D)
    target:       (B,) int32 class indices
    returns:      (B, SEQ_LEN, D)
    """
    B, D = bias.shape
    n_cls, n_suf = token_suffix.shape[0], token_suffix.shape[1]
    assert B % B_TILE == 0, "batch must be a multiple of B_TILE"
    bias3 = bias.reshape(B, 1, D)       # keep last-two block dims == full dims

    grid_spec = pltpu.PrefetchScalarGridSpec(
        num_scalar_prefetch=1,          # `target` lives in SMEM
        grid=(B // B_TILE,),
        in_specs=[
            # Resident class tables + ctx: constant block index -> fetched once.
            pl.BlockSpec((n_cls, 1, D), lambda i, tgt: (0, 0, 0)),
            pl.BlockSpec((n_cls, n_suf, D), lambda i, tgt: (0, 0, 0)),
            pl.BlockSpec((N_CTX, D), lambda i, tgt: (0, 0)),
            # Per-tile bias.
            pl.BlockSpec((B_TILE, 1, D), lambda i, tgt: (i, 0, 0)),
        ],
        out_specs=pl.BlockSpec((B_TILE, SEQ_LEN, D), lambda i, tgt: (i, 0, 0)),
    )

    return pl.pallas_call(
        _prompt_kernel,
        out_shape=jax.ShapeDtypeStruct((B, SEQ_LEN, D), DTYPE),
        grid_spec=grid_spec,
        compiler_params=pltpu.CompilerParams(
            dimension_semantics=("parallel",),   # disjoint output tiles per step
        ),
    )(target, token_prefix, token_suffix, ctx, bias3)


def reference_forward(token_prefix, token_suffix, ctx, bias, target):
    prefix = token_prefix[target]                     # (B, 1, D)
    suffix = token_suffix[target]                     # (B, N_SUF, D)
    ctx_shifted = ctx[None, :, :] + bias[:, None, :]  # (B, N_CTX, D)
    return jnp.concatenate([prefix, ctx_shifted, suffix], axis=1)


if __name__ == "__main__":
    key = jax.random.PRNGKey(0)
    k_emb, k_ctx, k_bias, k_tgt = jax.random.split(key, 4)

    # Deterministic stand-in for clip_model.token_embedding(tokenized_prompts):
    # full embedding (N_CLS, SEQ_LEN, D); prefix = [:, :1], suffix = [:, 1+n_ctx:].
    # TODO(synk): CLIP tokenizer / token_embedding construction is host-side
    # __init__ preprocessing and is not part of the translated forward pass.
    embedding = jax.random.normal(k_emb, (N_CLS, SEQ_LEN, CTX_DIM), dtype=DTYPE)
    token_prefix = embedding[:, :1, :]
    token_suffix = embedding[:, 1 + N_CTX:, :]

    # ctx_vectors ~ Normal(0, 0.02)  (nn.init.normal_(ctx_vectors, std=0.02))
    ctx = 0.02 * jax.random.normal(k_ctx, (N_CTX, CTX_DIM), dtype=DTYPE)

    bias = jax.random.normal(k_bias, (BATCH, CTX_DIM), dtype=DTYPE)
    target = jax.random.randint(k_tgt, (BATCH,), 0, N_CLS, dtype=jnp.int32)

    prompts = prompt_learner_forward(token_prefix, token_suffix, ctx, bias, target)
    prompts = jax.block_until_ready(prompts)

    ref = reference_forward(token_prefix, token_suffix, ctx, bias, target)
    assert prompts.shape == (BATCH, SEQ_LEN, CTX_DIM)
    assert jnp.allclose(prompts, ref, atol=1e-6), "mismatch vs reference"

    print("KERNEL_OK")
</pallas_src>

<mosaic_0001>
module attributes {stable_mosaic.version = 11 : i64} {
  func.func @_prompt_kernel(%arg0: i32, %arg1: memref<8xi32, #tpu.memory_space<smem>>, %arg2: memref<4x1x128xf32, #tpu.memory_space<vmem>>, %arg3: memref<4x11x128xf32, #tpu.memory_space<vmem>>, %arg4: memref<4x128xf32, #tpu.memory_space<vmem>>, %arg5: memref<4x1x128xf32, #tpu.memory_space<vmem>>, %arg6: memref<4x16x128xf32, #tpu.memory_space<vmem>>) attributes {dimension_semantics = [#tpu.dimension_semantics<parallel>], iteration_bounds = array<i64: 2>, scalar_prefetch = 1 : i64, scratch_operands = 0 : i64, tpu.core_type = #tpu.core_type<tc>, window_params = [{pipeline_mode = #tpu.pipeline_mode<synchronous>, transform_indices = @transform_0, window_bounds = array<i64: 4, 1, 128>}, {pipeline_mode = #tpu.pipeline_mode<synchronous>, transform_indices = @transform_1, window_bounds = array<i64: 4, 11, 128>}, {pipeline_mode = #tpu.pipeline_mode<synchronous>, transform_indices = @transform_2, window_bounds = array<i64: 4, 128>}, {transform_indices = @transform_3, window_bounds = array<i64: 4, 1, 128>}, {transform_indices = @transform_4, window_bounds = array<i64: 4, 16, 128>}]} {
    %c4_i32 = arith.constant 4 : i32
    %0 = arith.muli %arg0, %c4_i32 : i32
    %c0 = arith.constant 0 : index
    %c0_0 = arith.constant 0 : index
    %1 = vector.load %arg4[%c0, %c0_0] : memref<4x128xf32, #tpu.memory_space<vmem>>, vector<4x128xf32>
    %2 = vector.shape_cast %1 : vector<4x128xf32> to vector<1x4x128xf32>
    %c0_1 = arith.constant 0 : index
    %c0_2 = arith.constant 0 : index
    %c0_3 = arith.constant 0 : index
    %3 = vector.load %arg5[%c0_1, %c0_2, %c0_3] : memref<4x1x128xf32, #tpu.memory_space<vmem>>, vector<4x1x128xf32>
    %4 = vector.broadcast %2 : vector<1x4x128xf32> to vector<4x4x128xf32>
    %5 = vector.broadcast %3 : vector<4x1x128xf32> to vector<4x4x128xf32>
    %6 = arith.addf %4, %5 : vector<4x4x128xf32>
    %c0_i32 = arith.constant 0 : i32
    %7 = arith.addi %0, %c0_i32 : i32
    %8 = arith.index_cast %7 : i32 to index
    %9 = memref.load %arg1[%8] : memref<8xi32, #tpu.memory_space<smem>>
    %10 = arith.index_cast %9 : i32 to index
    %c0_4 = arith.constant 0 : index
    %c0_5 = arith.constant 0 : index
    %11 = vector.load %arg2[%10, %c0_4, %c0_5] : memref<4x1x128xf32, #tpu.memory_space<vmem>>, vector<1x1x128xf32>
    %12 = vector.shape_cast %11 : vector<1x1x128xf32> to vector<1x128xf32>
    %13 = arith.index_cast %9 : i32 to index
    %c0_6 = arith.constant 0 : index
    %c0_7 = arith.constant 0 : index
    %14 = vector.load %arg3[%13, %c0_6, %c0_7] : memref<4x11x128xf32, #tpu.memory_space<vmem>>, vector<1x11x128xf32>
    %15 = vector.shape_cast %14 : vector<1x11x128xf32> to vector<11x128xf32>
    %c1_i32 = arith.constant 1 : i32
    %16 = arith.addi %0, %c1_i32 : i32
    %17 = arith.index_cast %16 : i32 to index
    %18 = memref.load %arg1[%17] : memref<8xi32, #tpu.memory_space<smem>>
    %19 = arith.index_cast %18 : i32 to index
    %c0_8 = arith.constant 0 : index
    %c0_9 = arith.constant 0 : index
    %20 = vector.load %arg2[%19, %c0_8, %c0_9] : memref<4x1x128xf32, #tpu.memory_space<vmem>>, vector<1x1x128xf32>
    %21 = vector.shape_cast %20 : vector<1x1x128xf32> to vector<1x128xf32>
    %22 = arith.index_cast %18 : i32 to index
    %c0_10 = arith.constant 0 : index
    %c0_11 = arith.constant 0 : index
    %23 = vector.load %arg3[%22, %c0_10, %c0_11] : memref<4x11x128xf32, #tpu.memory_space<vmem>>, vector<1x11x128xf32>
    %24 = vector.shape_cast %23 : vector<1x11x128xf32> to vector<11x128xf32>
    %c2_i32 = arith.constant 2 : i32
    %25 = arith.addi %0, %c2_i32 : i32
    %26 = arith.index_cast %25 : i32 to index
    %27 = memref.load %arg1[%26] : memref<8xi32, #tpu.memory_space<smem>>
    %28 = arith.index_cast %27 : i32 to index
    %c0_12 = arith.constant 0 : index
    %c0_13 = arith.constant 0 : index
    %29 = vector.load %arg2[%28, %c0_12, %c0_13] : memref<4x1x128xf32, #tpu.memory_space<vmem>>, vector<1x1x128xf32>
    %30 = vector.shape_cast %29 : vector<1x1x128xf32> to vector<1x128xf32>
    %31 = arith.index_cast %27 : i32 to index
    %c0_14 = arith.constant 0 : index
    %c0_15 = arith.constant 0 : index
    %32 = vector.load %arg3[%31, %c0_14, %c0_15] : memref<4x11x128xf32, #tpu.memory_space<vmem>>, vector<1x11x128xf32>
    %33 = vector.shape_cast %32 : vector<1x11x128xf32> to vector<11x128xf32>
    %c3_i32 = arith.constant 3 : i32
    %34 = arith.addi %0, %c3_i32 : i32
    %35 = arith.index_cast %34 : i32 to index
    %36 = memref.load %arg1[%35] : memref<8xi32, #tpu.memory_space<smem>>
    %37 = arith.index_cast %36 : i32 to index
    %c0_16 = arith.constant 0 : index
    %c0_17 = arith.constant 0 : index
    %38 = vector.load %arg2[%37, %c0_16, %c0_17] : memref<4x1x128xf32, #tpu.memory_space<vmem>>, vector<1x1x128xf32>
    %39 = vector.shape_cast %38 : vector<1x1x128xf32> to vector<1x128xf32>
    %40 = arith.index_cast %36 : i32 to index
    %c0_18 = arith.constant 0 : index
    %c0_19 = arith.constant 0 : index
    %41 = vector.load %arg3[%40, %c0_18, %c0_19] : memref<4x11x128xf32, #tpu.memory_space<vmem>>, vector<1x11x128xf32>
    %42 = vector.shape_cast %41 : vector<1x11x128xf32> to vector<11x128xf32>
    %43 = vector.shape_cast %12 : vector<1x128xf32> to vector<1x1x128xf32>
    %44 = vector.shape_cast %21 : vector<1x128xf32> to vector<1x1x128xf32>
    %45 = vector.shape_cast %30 : vector<1x128xf32> to vector<1x1x128xf32>
    %46 = vector.shape_cast %39 : vector<1x128xf32> to vector<1x1x128xf32>
    %47 = tpu.concatenate %43, %44, %45, %46 in 0 : vector<1x1x128xf32>, vector<1x1x128xf32>, vector<1x1x128xf32>, vector<1x1x128xf32> -> vector<4x1x128xf32>
    %48 = vector.shape_cast %15 : vector<11x128xf32> to vector<1x11x128xf32>
    %49 = vector.shape_cast %24 : vector<11x128xf32> to vector<1x11x128xf32>
    %50 = vector.shape_cast %33 : vector<11x128xf32> to vector<1x11x128xf32>
    %51 = vector.shape_cast %42 : vector<11x128xf32> to vector<1x11x128xf32>
    %52 = tpu.concatenate %48, %49, %50, %51 in 0 : vector<1x11x128xf32>, vector<1x11x128xf32>, vector<1x11x128xf32>, vector<1x11x128xf32> -> vector<4x11x128xf32>
    %53 = tpu.concatenate %47, %6, %52 in 1 : vector<4x1x128xf32>, vector<4x4x128xf32>, vector<4x11x128xf32> -> vector<4x16x128xf32>
    %c0_20 = arith.constant 0 : index
    %c0_21 = arith.constant 0 : index
    %c0_22 = arith.constant 0 : index
    %54 = vector.load %arg6[%c0_20, %c0_21, %c0_22] : memref<4x16x128xf32, #tpu.memory_space<vmem>>, vector<4x16x128xf32>
    tpu.vector_store %arg6[%c0_20, %c0_21, %c0_22], %53 {strides = array<i32>} : memref<4x16x128xf32, #tpu.memory_space<vmem>>, vector<4x16x128xf32>,
    return
  }
  func.func @transform_0(%arg0: i32, %arg1: memref<8xi32, #tpu.memory_space<smem>>) -> (i32, i32, i32) {
    %c0_i32 = arith.constant 0 : i32
    %c0_i32_0 = arith.constant 0 : i32
    %c0_i32_1 = arith.constant 0 : i32
    %c0_i32_2 = arith.constant 0 : i32
    return %c0_i32, %c0_i32_0, %c0_i32_1 : i32, i32, i32
  }
  func.func @transform_1(%arg0: i32, %arg1: memref<8xi32, #tpu.memory_space<smem>>) -> (i32, i32, i32) {
    %c0_i32 = arith.constant 0 : i32
    %c0_i32_0 = arith.constant 0 : i32
    %c0_i32_1 = arith.constant 0 : i32
    %c0_i32_2 = arith.constant 0 : i32
    return %c0_i32, %c0_i32_0, %c0_i32_1 : i32, i32, i32
  }
  func.func @transform_2(%arg0: i32, %arg1: memref<8xi32, #tpu.memory_space<smem>>) -> (i32, i32) {
    %c0_i32 = arith.constant 0 : i32
    %c0_i32_0 = arith.constant 0 : i32
    %c0_i32_1 = arith.constant 0 : i32
    return %c0_i32, %c0_i32_0 : i32, i32
  }
  func.func @transform_3(%arg0: i32, %arg1: memref<8xi32, #tpu.memory_space<smem>>) -> (i32, i32, i32) {
    %c0_i32 = arith.constant 0 : i32
    %c0_i32_0 = arith.constant 0 : i32
    %c0_i32_1 = arith.constant 0 : i32
    return %arg0, %c0_i32, %c0_i32_0 : i32, i32, i32
  }
  func.func @transform_4(%arg0: i32, %arg1: memref<8xi32, #tpu.memory_space<smem>>) -> (i32, i32, i32) {
    %c0_i32 = arith.constant 0 : i32
    %c0_i32_0 = arith.constant 0 : i32
    %c0_i32_1 = arith.constant 0 : i32
    return %arg0, %c0_i32, %c0_i32_0 : i32, i32, i32
  }
}

</mosaic_0001>

<bundles_post_ra>
// kernel: tpu_custom_call.1
= control target key start
LH: loop header
LB: loop body
LE: loop exit
PB: predicated region body
PF: predicated region fallthrough
CT: control target
= control target key end

     0   :  { %s770_s0 = inlined_call_operand.vmem [shape: s32[8], index: 0, kind: input, shape index: {}]   ;;  %s771_s1 = inlined_call_operand.vmem [shape: f32[4,1,128], index: 1, kind: input, shape index: {}]   ;;  %s772_s2 = inlined_call_operand.vmem [shape: f32[4,11,128], index: 2, kind: input, shape index: {}]   ;;  %s773_s3 = inlined_call_operand.vmem [shape: f32[4,128], index: 3, kind: input, shape index: {}]   ;;  %s774_s4 = inlined_call_operand.vmem [shape: f32[8,1,128], index: 4, kind: input, shape index: {}]   ;;  %s775_s5 = inlined_call_operand.hbm [shape: f32[8,16,128], index: 5, kind: output, shape index: {}]  }
   0x1   :  { %s10_s20 = sshll.u32 %s770_s0, 4  ;;  %s11_s20 = int_to_ptr.vmem [resolvable:$true] %s10_s20 }
   0x2   :  { %s477_s21 = scalar_lea.vmem %s11_s20, 16  ;;  %p482_p1 = scmp.lt.s32.totalorder %s11_s20, %s11_s20 }
   0x3   :  { %p478_p0 = scmp.ne.s32.totalorder %s11_s20, %s477_s21  ;;  %p483_p2 = scmp.lt.s32.totalorder %s477_s21, %s477_s21 }
   0x5   :  { %p484_p3 = por %p483_p2, %p482_p1 }
   0x7   :  { %p485_p4 = pnand %p484_p3, %p478_p0 }
   0x9   :  { %488 = shalt.err (!%p485_p4)  }
   0xa   :  { %s553_s22 = smov [#allocation3]  }
   0xb   :  { %13 = dma.vmem_to_smem %s11_s20, 16, %s553_s22, [#allocation2] }
   0xc   :  { %531 = dma.done.wait [#allocation2], 16 }
   0xd   :  { %532 = vsyncadd [#allocation2], 4294967280 }
   0xe   :  { %15 = sfence }
   0xf   :  { %16 = vsyncpa [#allocation5], 0 }
  0x10   :  { %18 = vsyncpa [#allocation5 + $0x1], 0  ;;  %s590_s23 = smov 0   ;;  %s592_s24 = smov 0  }
  0x11   :  { %s594_s0 = smov 0   ;;  %s596_s25 = smov 0  }
  0x12 LB: > { %s611_s26 = sadd.s32 4294967295, %s551_s25   ;;  %s412_s27 = sadd.s32 4294967294, %s551_s25   ;;  %s551_s25 = sphi %s596_s25, %s781_s25   ;;  %s547_s0 = sphi %s594_s0, %s780_s0   ;;  %s543_s24 = sphi %s592_s24, %s779_s24   ;;  %s539_s23 = sphi %s590_s23, %s778_s23  }
  0x13   : > { %s615_s28 = sadd.s32 1, %s551_s25   ;;  %s120_s29 = sadd.s32 1, %s547_s0 }
  0x14   : > { %s117_s30 = ssub.s32 %s551_s25, %s615_s28  ;;  %p130_p5 = scmp.ne.s32.totalorder %s547_s0, %s543_s24 }
  0x15   : > { %p118_p6 = scmp.eq.s32.totalorder %s117_s30, 0  ;;  %p131_p7 = scmp.eq.s32.totalorder %s611_s26, 1 }
  0x16   : > { %p136_p8 = scmp.ne.s32.totalorder %s543_s24, %s539_s23  ;;  %p137_p9 = scmp.eq.s32.totalorder %s412_s27, 1 }
  0x17   : > { %s626_s6 = scalar_select %p118_p6, %s547_s0, %s120_s29  }
  0x18   : > { %p628_p10 = por %p131_p7, %p130_p5  ;;  %p632_p11 = por %p137_p9, %p136_p8 }
  0x19   : > { %p415_p12 = scmp.ge.s32.totalorder %s551_s25, 1  ;;  %p172_p13 = scmp.lt.s32.totalorder %s551_s25, 3 }
  0x1b   : > { %p173_p0 = pnand %p415_p12, %p172_p13 }
  0x1c   : > { %s639_s9 = sshll.u32 (!%p173_p0), %s611_s26, 2  ;;  %s194_s10 = sand.u32 (!%p173_p0), 1, %s543_s24  }
  0x1d   : > { %176 = sbr.rel (%p173_p0) target bundleno = 67 (0x43), region = 36  ;;  %p198_p1 = scmp.lt.s32.totalorder (!%p173_p0), %s639_s9, 7 }
  0x1e   : > { %s237_s11 = sld [smem:[#allocation3 + %s639_s9]] (!%p173_p0)  ;;  %s650_s15 = sshll.u32 (!%p173_p0), %s194_s10, 6 }
  0x1f   : > { %s244_s19 = sadd.s32 (!%p173_p0), 1, %s639_s9  ;;  %s252_s20 = sadd.s32 (!%p173_p0), 2, %s639_s9 }
  0x20   : > { %s657_s21 = sld [smem:[#allocation3 + %s244_s19]] (!%p173_p0)  ;;  %s260_s22 = sadd.s32 (!%p173_p0), 3, %s639_s9 }
  0x21   : > { %s666_s17 = sld [smem:[#allocation3 + %s252_s20]] (!%p173_p0)  ;;  %s679_s27 = scalar_lea.vmem (!%p173_p0), [#allocation4], %s650_s15 }
  0x22   : > { %s199_s12 = scalar_select %p198_p1, %s639_s9, 7  ;;  %v204_v0 = vld [vmem:[%s773_s3] sm:$0xf]  ;;  %vm309_vm0 = vcmask 1040384   ;;  %vm288_vm1 = vcmask 1044480  }
  0x23   : > { %s668_s9 = sld [smem:[#allocation3 + %s260_s22]]  ;;  %s341_s22 = sshll.u32 %s679_s27, 4  ;;  %s713_s22 = int_to_ptr.vmem [resolvable:$true] %s341_s22 }
  0x24   : > { %s200_s18 = scalar_lea.vmem %s774_s4, %s199_s12  ;;  %s238_s30 = scalar_lea.vmem %s771_s1, %s237_s11 }
  0x25   : > { %v419_v1 = vld [vmem:[%s200_s18] ss:$0 sm:$0xff]  ;;  %v420_v2 = vld [vmem:[%s200_s18 + $0x1] ss:$0 sm:$0xff]  ;;  %v421_v5 = vld [vmem:[%s200_s18 + $0x2] ss:$0 sm:$0xff] }
  0x26   : > { %v233_v3 = vadd.f32 %v419_v1, %v204_v0  ;;  %v234_v4 = vadd.f32 %v420_v2, %v204_v0  ;;  %v422_v6 = vld [vmem:[%s200_s18 + $0x3] ss:$0 sm:$0xff]  ;;  %s423_s13 = sshll.u32 %s237_s11, 4  ;;  %v239_v7 = vld [vmem:[%s238_s30] sm:$0x1]  ;;  %v235_v9 = vadd.f32 %v421_v5, %v204_v0  ;;  %s246_s19 = scalar_lea.vmem %s771_s1, %s657_s21 }
  0x27   : > { %s241_s16 = scalar_lea.vmem %s772_s2, %s423_s13  ;;  %v236_v12 = vadd.f32 %v422_v6, %v204_v0  ;;  %s424_s20 = sshll.u32 %s657_s21, 4  ;;  %v247_v20 = vld [vmem:[%s246_s19] sm:$0x1] }
  0x28   : > { %v272_v8 = vrot.slane %v233_v3, 7  ;;  %v242_v10 = vld [vmem:[%s241_s16] sm:$0xff]  ;;  %v243_v11 = vld [vmem:[%s241_s16 + $0x8] sm:$0x7]  ;;  %v273_v16 = vrot.slane %v234_v4, 7  ;;  %v274_v19 = vrot.slane %v235_v9, 7  ;;  %s249_s13 = scalar_lea.vmem %s772_s2, %s424_s20  ;;  %s254_s14 = scalar_lea.vmem %s771_s1, %s666_s17 }
  0x29   : > { %v289_v13 = vrot.slane %v242_v10, 3  ;;  %v290_v15 = vrot.slane %v243_v11, 3  ;;  %v250_v21 = vld [vmem:[%s249_s13] sm:$0xff]  ;;  %v251_v23 = vld [vmem:[%s249_s13 + $0x8] sm:$0x7]  ;;  %s425_s12 = sshll.u32 %s666_s17, 4  ;;  %s262_s29 = scalar_lea.vmem %s771_s1, %s668_s9 }
  0x2a   : > { %v310_v14 = vsel %vm309_vm0, %v239_v7, %v272_v8  ;;  %v311_v22 = vsel %vm309_vm0, %v247_v20, %v273_v16  ;;  %v275_v24 = vrot.slane %v236_v12, 7  ;;  %v292_v25 = vrot.slane %v250_v21, 3  ;;  %v255_v27 = vld [vmem:[%s254_s14] sm:$0x1]  ;;  %s257_s18 = scalar_lea.vmem %s772_s2, %s425_s12  ;;  %s426_s17 = sshll.u32 %s668_s9, 4 }
  0x2b   : > { %v314_v17 = vsel %vm288_vm1, %v310_v14, %v289_v13  ;;  %v291_v18 = vsel %vm288_vm1, %v289_v13, %v290_v15  ;;  %v293_v26 = vrot.slane %v251_v23, 3  ;;  %v258_v28 = vld [vmem:[%s257_s18] sm:$0xff]  ;;  %v312_v29 = vsel %vm309_vm0, %v255_v27, %v274_v19  ;;  %v259_v30 = vld [vmem:[%s257_s18 + $0x8] sm:$0x7]  ;;  %s265_s21 = scalar_lea.vmem %s772_s2, %s426_s17  ;;  %s434_s15 = sshll.u32 %s611_s26, 10 }
  0x2c   : > { %318 = vst [vmem:[%s679_s27] sm:$0xff] %v314_v17  ;;  %319 = vst [vmem:[%s679_s27 + $0x8] sm:$0xff] %v291_v18  ;;  %v263_v31 = vld [vmem:[%s262_s29] sm:$0x1]  ;;  %v315_v32 = vsel %vm288_vm1, %v311_v22, %v292_v25  ;;  %v295_v34 = vrot.slane %v258_v28, 3  ;;  %v296_v35 = vrot.slane %v259_v30, 3  ;;  %s722_s14 = scalar_lea.hbm %s775_s5, %s434_s15  ;;  %s730_s12 = scalar_lea.sflag [#allocation5], %s194_s10 }
  0x2d   : > { %v294_v33 = vsel %vm288_vm1, %v292_v25, %v293_v26  ;;  %320 = vst [vmem:[%s679_s27 + $0x10] sm:$0xff] %v315_v32  ;;  %v266_v36 = vld [vmem:[%s265_s21] sm:$0xff]  ;;  %v313_v37 = vsel %vm309_vm0, %v263_v31, %v275_v24  ;;  %v267_v38 = vld [vmem:[%s265_s21 + $0x8] sm:$0x7]  ;;  %s489_s16 = scalar_lea.vmem %s713_s22, 1024  ;;  %s554_s11 = smov [#allocation4]  }
  0x2e   : > { %321 = vst [vmem:[%s679_s27 + $0x18] sm:$0xff] %v294_v33  ;;  %v316_v39 = vsel %vm288_vm1, %v312_v29, %v295_v34  ;;  %v297_v40 = vsel %vm288_vm1, %v295_v34, %v296_v35  ;;  %v298_v41 = vrot.slane %v266_v36, 3  ;;  %v299_v42 = vrot.slane %v267_v38, 3  ;;  %p490_p2 = scmp.ne.s32.totalorder %s713_s22, %s489_s16  ;;  %s493_s18 = sshll.u32 %s554_s11, 4  ;;  %s494_s18 = int_to_ptr.vmem [resolvable:$false] %s493_s18 }
  0x2f   : > { %322 = vst [vmem:[%s679_s27 + $0x20] sm:$0xff] %v316_v39  ;;  %323 = vst [vmem:[%s679_s27 + $0x28] sm:$0xff] %v297_v40  ;;  %s495_s19 = scalar_lea.vmem %s494_s18, 2048  ;;  %p496_p5 = scmp.lt.s32.totalorder %s713_s22, %s494_s18 }
  0x30   : > { %v317_v43 = vsel %vm288_vm1, %v313_v37, %v298_v41  ;;  %v300_v44 = vsel %vm288_vm1, %v298_v41, %v299_v42  ;;  %p491_p3 = pnand %p490_p2, %p628_p10  ;;  %p497_p6 = scmp.lt.s32.totalorder %s495_s19, %s489_s16 }
  0x31   : > { %324 = vst [vmem:[%s679_s27 + $0x30] sm:$0xff] %v317_v43  ;;  %325 = vst [vmem:[%s679_s27 + $0x38] sm:$0xff] %v300_v44 }
  0x32   : > { %p492_p4 = pneg %p491_p3  ;;  %p498_p7 = por %p497_p6, %p496_p5 }
  0x34   : > { %p499_p8 = pnand %p498_p7, %p492_p4 }
  0x36   : > { %502 = shalt.err (!%p499_p8)
}
  0x37   : > { %s503_s10 = scalar_lea.hbm %s722_s14, 1024  ;;  %s507_s29 = scalar_lea.hbm %s775_s5, 2048 }
  0x38   : > { %p504_p9 = scmp.ne.s32.totalorder %s722_s14, %s503_s10  ;;  %p508_p0 = scmp.lt.s32.totalorder %s722_s14, %s775_s5 }
  0x39   : > { %p509_p1 = scmp.lt.s32.totalorder %s507_s29, %s503_s10 }
  0x3a   : > { %p505_p12 = pnand %p504_p9, %p628_p10 }
  0x3b   : > { %p510_p2 = por %p509_p1, %p508_p0 }
  0x3c   : > { %p506_p13 = pneg %p505_p12 }
  0x3e   : > { %p511_p3 = pnand %p510_p2, %p506_p13 }
  0x40   : > { %514 = shalt.err (!%p511_p3)
}
  0x41   : > { %s555_s13 = smov 128   ;;  %s556_s21 = smov 8  }
  0x42   : > { %435 = dma.vmem_to_hbm [thread:$0]  (%p628_p10), %s713_s22, 1024, %s722_s14, %s730_s12, %s555_s13, %s555_s13, %s556_s21  }
  0x43 PF: > { %p441_p4 = scmp.ge.s32.totalorder %s551_s25, 2  ;;  %s356_s15 = sand.u32 1, %s539_s23  }
  0x44   : > { %s357_s26 = scalar_lea.sflag [#allocation5], %s356_s15 }
  0x45   : > { %p438_p5 = pnand %p441_p4, %p632_p11 }
  0x47   : > { %p439_p6 = pneg %p438_p5 }
  0x49   : > { %534 = dma.done.wait (%p439_p6), %s357_s26, 1024  }
  0x4a   : > { %536 = vsyncadd (%p439_p6), %s357_s26, 4294966272  ;;  %p21_p7 = scmp.ge.s32.totalorder %s615_s28, 4   ;;  %s778_s23 = smov %s543_s24 }
  0x4b   : > { %s779_s24 = smov %s547_s0  ;;  %s780_s0 = smov %s626_s6 }
  0x4c   : > { %s781_s25 = smov %s615_s28  ;;  %23 = sbr.rel (!%p21_p7) target bundleno = 18 (0x12), region = 79 }
  0x51   :  { %362 = vsyncpa [#allocation5], 1 }
  0x52   :  { %364 = vsyncpa [#allocation5 + $0x1], 1 }

</bundles_post_ra>
